<compile_context>
chip_gen: v6e
topology: v6e:2x2x1
jax: 0.10.0
libtpu: 0.0.40
codegen_flags: <defaults>
</compile_context>

<pallas_src>
import functools
import math

import jax
import jax.numpy as jnp
from jax.experimental import pallas as pl
from jax.experimental.pallas import tpu as pltpu


def _mha_attention_kernel(vl_ref,                       # SMEM scalar prefetch: (B,) int32
                          q_ref, k_ref, v_ref,          # VMEM tiles (bf16)
                          out_ref,                      # (batch_block, Q, N) f32, resident
                          *, num_heads, head_dim, kv_tile, batch_block):
    kt = pl.program_id(1)

    @pl.when(kt == 0)
    def _init():
        out_ref[...] = jnp.zeros_like(out_ref)

    q_len = q_ref.shape[1]
    neg = jnp.float32(-1_000_000.0)
    # Key-column validity for this K tile (one mask per batch, shared by all heads).
    col = jax.lax.broadcasted_iota(jnp.int32, (q_len, kv_tile), 1) + kt * kv_tile

    b0 = pl.program_id(0) * batch_block
    for bi in range(batch_block):                 # static unroll over fused batches
        key_valid = col < vl_ref[b0 + bi]
        qb = q_ref[bi]                            # (Q,  N) bf16 — one dense load
        kb = k_ref[bi]                            # (TK, N) bf16
        vb = v_ref[bi]                            # (TK, N) bf16

        parts = []
        for h in range(num_heads):                # static unroll; clean 2-D MXU dots
            lo = h * head_dim
            # TODO(synk): 32-lane head slices can cause per-head relayouts; if H/head_dim
            #             grow, make H a grid axis or verify pl.lower_as_mlir emits no copies.
            qh = qb[:, lo:lo + head_dim]          # (Q,  dh)
            kh = kb[:, lo:lo + head_dim]          # (TK, dh)
            vh = vb[:, lo:lo + head_dim]          # (TK, dh)

            # scores = q @ k^T  (the literal 1/sqrt(3) scale is folded into qp upstream).
            s = jax.lax.dot_general(qh, kh, (((1,), (1,)), ((), ())),
                                    preferred_element_type=jnp.float32)   # (Q, TK) f32
            s = jnp.where(key_valid, s, neg)

            # softmax over dim=1 of (B*H, Q, K) == the *query* axis, literal to the source.
            m = jnp.max(s, axis=0, keepdims=True)
            e = jnp.exp(s - m)
            w = e * pl.reciprocal(jnp.sum(e, axis=0, keepdims=True), approx=True)

            parts.append(jnp.dot(w.astype(jnp.bfloat16), vh,
                                 preferred_element_type=jnp.float32))      # (Q, dh) f32

        # One lane-dense (Q, N) accumulate per batch (head slots are independent columns;
        # partial sums over K tiles are exact because softmax columns are independent).
        out_ref[bi] = out_ref[bi] + jnp.concatenate(parts, axis=-1)


def _choose_kv_tile(seq_k):
    """Keys per K-step. bf16 K+V tiles at N=128 stay ~1 MiB per fused batch row even at
    the 2048 cap — double-buffered this fits the default scoped VMEM on every chip."""
    cap = 2048
    if seq_k <= cap:
        return ((seq_k + 7) // 8) * 8     # single K step, sublane-aligned
    return cap


def _choose_batch_block(batch):
    """Fuse several batches per grid step to amortize the ~0.35us per-step overhead, but
    keep >= 2 parallel steps when possible so both v7x TensorCores get work."""
    for bb in (4, 2):
        if batch % bb == 0 and batch // bb >= 2:
            return bb
    return 1


@functools.partial(jax.jit, static_argnames=("num_heads",))
def multi_head_attention(queries, keys, values, valid_lens,
                         w_q, w_k, w_v, w_o, *, num_heads):
    """queries/keys/values: (B, S, D_in); weights stored (in_features, out_features)."""
    B, Q, _ = queries.shape
    _, K, _ = keys.shape
    N = w_q.shape[1]
    assert N % num_heads == 0
    head_dim = N // num_heads
    scale = 1.0 / math.sqrt(3.0)   # literal: d = queries.dim() == 3 in the PyTorch source

    # Input projections hoisted out of the grid (default precision).  bf16 MXU operands
    # for the kernel; f32 accumulation happens inside the kernel dots.
    qp = (jnp.einsum('bsd,dn->bsn', queries, w_q) * scale).astype(jnp.bfloat16)
    kp = jnp.einsum('bsd,dn->bsn', keys, w_k).astype(jnp.bfloat16)
    vp = jnp.einsum('bsd,dn->bsn', values, w_v).astype(jnp.bfloat16)

    # Pad K up to a multiple of the kv tile.  V is zero-padded so padded key columns
    # contribute nothing even though masked columns get uniform 1/Q softmax weights.
    kv_tile = _choose_kv_tile(K)
    k_pad = pl.cdiv(K, kv_tile) * kv_tile
    if k_pad != K:
        pad = ((0, 0), (0, k_pad - K), (0, 0))
        kp = jnp.pad(kp, pad)
        vp = jnp.pad(vp, pad)

    batch_block = _choose_batch_block(B)
    grid = (B // batch_block, k_pad // kv_tile)

    kernel = functools.partial(
        _mha_attention_kernel,
        num_heads=num_heads, head_dim=head_dim,
        kv_tile=kv_tile, batch_block=batch_block)

    grid_spec = pltpu.PrefetchScalarGridSpec(
        num_scalar_prefetch=1,
        grid=grid,
        in_specs=[
            pl.BlockSpec((batch_block, Q, N),       lambda b, kt, vl: (b, 0, 0)),
            pl.BlockSpec((batch_block, kv_tile, N), lambda b, kt, vl: (b, kt, 0)),
            pl.BlockSpec((batch_block, kv_tile, N), lambda b, kt, vl: (b, kt, 0)),
        ],
        out_specs=pl.BlockSpec((batch_block, Q, N), lambda b, kt, vl: (b, 0, 0)),
    )

    cost = pl.CostEstimate(
        flops=4 * B * num_heads * Q * k_pad * head_dim,      # scores + weights @ values
        transcendentals=B * num_heads * Q * k_pad,           # exp
        bytes_accessed=(qp.size + kp.size + vp.size) * 2 + B * Q * N * 4)

    attn = pl.pallas_call(
        kernel,
        out_shape=jax.ShapeDtypeStruct((B, Q, N), jnp.float32),
        grid_spec=grid_spec,
        compiler_params=pltpu.CompilerParams(
            dimension_semantics=("parallel", "arbitrary"),
            vmem_limit_bytes=32 * 1024 * 1024),
        cost_estimate=cost,
    )(valid_lens.astype(jnp.int32), qp, kp, vp)

    # W_o hoisted out of the kernel: one big (B*Q, N) @ (N, N) MXU matmul in XLA.
    return jnp.einsum('bqn,nm->bqm', attn, w_o)


def _reference(queries, keys, values, valid_lens, w_q, w_k, w_v, w_o, num_heads):
    """Pure-JAX f32 HIGHEST-precision reference mirroring the PyTorch module (eval mode),
    bug-for-bug (scale 1/sqrt(3), softmax over the query axis)."""
    hp = jax.lax.Precision.HIGHEST
    B, Q, _ = queries.shape
    _, K, _ = keys.shape
    N = w_q.shape[1]
    dh = N // num_heads

    def split_heads(x):
        b, s, _ = x.shape
        x = x.reshape(b, s, num_heads, dh).transpose(0, 2, 1, 3)
        return x.reshape(b * num_heads, s, dh)

    q = split_heads(jnp.einsum('bsd,dn->bsn', queries, w_q, precision=hp))
    k = split_heads(jnp.einsum('bsd,dn->bsn', keys,    w_k, precision=hp))
    v = split_heads(jnp.einsum('bsd,dn->bsn', values,  w_v, precision=hp))

    vl = jnp.repeat(valid_lens, num_heads)                    # repeat_interleave over heads

    scores = jnp.einsum('bqd,bkd->bqk', q, k, precision=hp) / math.sqrt(3.0)
    mask = jnp.arange(K)[None, None, :] < vl[:, None, None]
    scores = jnp.where(mask, scores, -1_000_000.0)
    w = jax.nn.softmax(scores, axis=1)                        # dim=1 (query axis), literal
    out = jnp.einsum('bqk,bkd->bqd', w, v, precision=hp)
    out = out.reshape(B, num_heads, Q, dh).transpose(0, 2, 1, 3).reshape(B, Q, N)
    return jnp.einsum('bqn,nm->bqm', out, w_o, precision=hp)  # W_o


if __name__ == "__main__":
    B, Q, K = 2, 8, 8
    D_in = 32
    num_hidden, num_heads = 128, 4   # head_dim = 32; lane-dense (128-wide) kernel output

    key = jax.random.PRNGKey(0)
    kq, kk, kv, k1, k2, k3, k4 = jax.random.split(key, 7)

    queries = jax.random.normal(kq, (B, Q, D_in), dtype=jnp.float32)
    keys_   = jax.random.normal(kk, (B, K, D_in), dtype=jnp.float32)
    values  = jax.random.normal(kv, (B, K, D_in), dtype=jnp.float32)
    valid_lens = jnp.array([3, 6], dtype=jnp.int32)

    # LazyLinear weights (bias=False), PyTorch-style U(-1/sqrt(fan_in), 1/sqrt(fan_in)),
    # stored (in_features, out_features) so the forward is x @ W.
    def linear_init(k, fan_in, fan_out):
        bound = 1.0 / math.sqrt(fan_in)
        return jax.random.uniform(k, (fan_in, fan_out), jnp.float32, -bound, bound)

    w_q = linear_init(k1, D_in, num_hidden)
    w_k = linear_init(k2, D_in, num_hidden)
    w_v = linear_init(k3, D_in, num_hidden)
    w_o = linear_init(k4, num_hidden, num_hidden)

    out = multi_head_attention(queries, keys_, values, valid_lens,
                               w_q, w_k, w_v, w_o, num_heads=num_heads)
    out = jax.block_until_ready(out)

    ref = _reference(queries, keys_, values, valid_lens, w_q, w_k, w_v, w_o, num_heads)
    assert out.shape == (B, Q, num_hidden)
    # bf16 MXU operands => looser tolerance vs. the f32 Precision.HIGHEST reference.
    assert jnp.allclose(out, ref, atol=5e-2, rtol=5e-2), "mismatch vs JAX reference"

    print("KERNEL_OK")
</pallas_src>

<mosaic_0001>
module attributes {stable_mosaic.version = 11 : i64} {
  func.func @_mha_attention_kernel(%arg0: i32, %arg1: i32, %arg2: memref<2xi32, #tpu.memory_space<smem>>, %arg3: memref<1x8x128xbf16, #tpu.memory_space<vmem>>, %arg4: memref<1x8x128xbf16, #tpu.memory_space<vmem>>, %arg5: memref<1x8x128xbf16, #tpu.memory_space<vmem>>, %arg6: memref<1x8x128xf32, #tpu.memory_space<vmem>>) attributes {dimension_semantics = [#tpu.dimension_semantics<parallel>, #tpu.dimension_semantics<arbitrary>], iteration_bounds = array<i64: 2, 1>, scalar_prefetch = 1 : i64, scratch_operands = 0 : i64, tpu.core_type = #tpu.core_type<tc>, window_params = [{transform_indices = @transform_0, window_bounds = array<i64: 1, 8, 128>}, {transform_indices = @transform_1, window_bounds = array<i64: 1, 8, 128>}, {transform_indices = @transform_2, window_bounds = array<i64: 1, 8, 128>}, {transform_indices = @transform_3, window_bounds = array<i64: 1, 8, 128>}]} {
    %c0_i32 = arith.constant 0 : i32
    %0 = arith.cmpi eq, %arg1, %c0_i32 : i32
    %1 = arith.extui %0 : i1 to i32
    %c0_i32_0 = arith.constant 0 : i32
    %2 = arith.cmpi ne, %1, %c0_i32_0 : i32
    scf.if %2 {
      %cst_35 = arith.constant 0.000000e+00 : f32
      %98 = vector.broadcast %cst_35 : f32 to vector<1x8x128xf32>
      %c0_36 = arith.constant 0 : index
      %c0_37 = arith.constant 0 : index
      %c0_38 = arith.constant 0 : index
      %99 = vector.load %arg6[%c0_36, %c0_37, %c0_38] : memref<1x8x128xf32, #tpu.memory_space<vmem>>, vector<1x8x128xf32>
      tpu.vector_store %arg6[%c0_36, %c0_37, %c0_38], %98 {strides = array<i32>} : memref<1x8x128xf32, #tpu.memory_space<vmem>>, vector<1x8x128xf32>,
    } else {
    }
    %3 = tpu.iota {dimensions = array<i32: 1>} : vector<8x8xi32>
    %c8_i32 = arith.constant 8 : i32
    %4 = arith.muli %arg1, %c8_i32 : i32
    %5 = vector.broadcast %4 : i32 to vector<8x8xi32>
    %6 = arith.addi %3, %5 : vector<8x8xi32>
    %c1_i32 = arith.constant 1 : i32
    %7 = arith.muli %arg0, %c1_i32 : i32
    %c0_i32_1 = arith.constant 0 : i32
    %8 = arith.addi %7, %c0_i32_1 : i32
    %9 = arith.index_cast %8 : i32 to index
    %10 = memref.load %arg2[%9] : memref<2xi32, #tpu.memory_space<smem>>
    %11 = vector.broadcast %10 : i32 to vector<8x8xi32>
    %12 = arith.cmpi slt, %6, %11 : vector<8x8xi32>
    %c0 = arith.constant 0 : index
    %c0_2 = arith.constant 0 : index
    %c0_3 = arith.constant 0 : index
    %13 = vector.load %arg3[%c0, %c0_2, %c0_3] : memref<1x8x128xbf16, #tpu.memory_space<vmem>>, vector<1x8x128xbf16>
    %14 = vector.shape_cast %13 : vector<1x8x128xbf16> to vector<8x128xbf16>
    %c0_4 = arith.constant 0 : index
    %c0_5 = arith.constant 0 : index
    %c0_6 = arith.constant 0 : index
    %15 = vector.load %arg4[%c0_4, %c0_5, %c0_6] : memref<1x8x128xbf16, #tpu.memory_space<vmem>>, vector<1x8x128xbf16>
    %16 = vector.shape_cast %15 : vector<1x8x128xbf16> to vector<8x128xbf16>
    %c0_7 = arith.constant 0 : index
    %c0_8 = arith.constant 0 : index
    %c0_9 = arith.constant 0 : index
    %17 = vector.load %arg5[%c0_7, %c0_8, %c0_9] : memref<1x8x128xbf16, #tpu.memory_space<vmem>>, vector<1x8x128xbf16>
    %18 = vector.shape_cast %17 : vector<1x8x128xbf16> to vector<8x128xbf16>
    %19 = vector.extract_strided_slice %14 {offsets = [0, 0], sizes = [8, 32], strides = [1, 1]} : vector<8x128xbf16> to vector<8x32xbf16>
    %20 = vector.extract_strided_slice %16 {offsets = [0, 0], sizes = [8, 32], strides = [1, 1]} : vector<8x128xbf16> to vector<8x32xbf16>
    %21 = vector.extract_strided_slice %18 {offsets = [0, 0], sizes = [8, 32], strides = [1, 1]} : vector<8x128xbf16> to vector<8x32xbf16>
    %cst = arith.constant dense<0.000000e+00> : vector<8x8xf32>
    %22 = tpu.matmul %19, %20, %cst {dimension_numbers = #tpu.dot_dimension_numbers<[1], [1], [0], [0], [0, 0, 1, 0], [], []>} : vector<8x32xbf16>, vector<8x32xbf16>, vector<8x8xf32> -> vector<8x8xf32>
    %cst_10 = arith.constant -1.000000e+06 : f32
    %23 = vector.broadcast %cst_10 : f32 to vector<8x8xf32>
    %24 = arith.select %12, %22, %23 : vector<8x8xi1>, vector<8x8xf32>
    %cst_11 = arith.constant dense<0xFF800000> : vector<8xf32>
    %25 = vector.multi_reduction <maximumf>, %24, %cst_11 [0] : vector<8x8xf32> to vector<8xf32>
    %26 = vector.shape_cast %25 : vector<8xf32> to vector<1x8xf32>
    %27 = vector.broadcast %26 : vector<1x8xf32> to vector<8x8xf32>
    %28 = arith.subf %24, %27 : vector<8x8xf32>
    %29 = math.exp %28 : vector<8x8xf32>
    %cst_12 = arith.constant dense<0.000000e+00> : vector<8xf32>
    %30 = vector.multi_reduction <add>, %29, %cst_12 [0] : vector<8x8xf32> to vector<8xf32>
    %31 = vector.shape_cast %30 : vector<8xf32> to vector<1x8xf32>
    %32 = tpu.reciprocal %31 {approx = true} : vector<1x8xf32> -> vector<1x8xf32>
    %33 = vector.broadcast %32 : vector<1x8xf32> to vector<8x8xf32>
    %34 = arith.mulf %29, %33 : vector<8x8xf32>
    %35 = arith.truncf %34 : vector<8x8xf32> to vector<8x8xbf16>
    %cst_13 = arith.constant dense<0.000000e+00> : vector<8x32xf32>
    %36 = tpu.matmul %35, %21, %cst_13 {dimension_numbers = #tpu.dot_dimension_numbers<[1], [0], [0], [1], [0, 0, 1, 1], [], []>} : vector<8x8xbf16>, vector<8x32xbf16>, vector<8x32xf32> -> vector<8x32xf32>
    %37 = vector.extract_strided_slice %14 {offsets = [0, 32], sizes = [8, 32], strides = [1, 1]} : vector<8x128xbf16> to vector<8x32xbf16>
    %38 = vector.extract_strided_slice %16 {offsets = [0, 32], sizes = [8, 32], strides = [1, 1]} : vector<8x128xbf16> to vector<8x32xbf16>
    %39 = vector.extract_strided_slice %18 {offsets = [0, 32], sizes = [8, 32], strides = [1, 1]} : vector<8x128xbf16> to vector<8x32xbf16>
    %cst_14 = arith.constant dense<0.000000e+00> : vector<8x8xf32>
    %40 = tpu.matmul %37, %38, %cst_14 {dimension_numbers = #tpu.dot_dimension_numbers<[1], [1], [0], [0], [0, 0, 1, 0], [], []>} : vector<8x32xbf16>, vector<8x32xbf16>, vector<8x8xf32> -> vector<8x8xf32>
    %cst_15 = arith.constant -1.000000e+06 : f32
    %41 = vector.broadcast %cst_15 : f32 to vector<8x8xf32>
    %42 = arith.select %12, %40, %41 : vector<8x8xi1>, vector<8x8xf32>
    %cst_16 = arith.constant dense<0xFF800000> : vector<8xf32>
    %43 = vector.multi_reduction <maximumf>, %42, %cst_16 [0] : vector<8x8xf32> to vector<8xf32>
    %44 = vector.shape_cast %43 : vector<8xf32> to vector<1x8xf32>
    %45 = vector.broadcast %44 : vector<1x8xf32> to vector<8x8xf32>
    %46 = arith.subf %42, %45 : vector<8x8xf32>
    %47 = math.exp %46 : vector<8x8xf32>
    %cst_17 = arith.constant dense<0.000000e+00> : vector<8xf32>
    %48 = vector.multi_reduction <add>, %47, %cst_17 [0] : vector<8x8xf32> to vector<8xf32>
    %49 = vector.shape_cast %48 : vector<8xf32> to vector<1x8xf32>
    %50 = tpu.reciprocal %49 {approx = true} : vector<1x8xf32> -> vector<1x8xf32>
    %51 = vector.broadcast %50 : vector<1x8xf32> to vector<8x8xf32>
    %52 = arith.mulf %47, %51 : vector<8x8xf32>
    %53 = arith.truncf %52 : vector<8x8xf32> to vector<8x8xbf16>
    %cst_18 = arith.constant dense<0.000000e+00> : vector<8x32xf32>
    %54 = tpu.matmul %53, %39, %cst_18 {dimension_numbers = #tpu.dot_dimension_numbers<[1], [0], [0], [1], [0, 0, 1, 1], [], []>} : vector<8x8xbf16>, vector<8x32xbf16>, vector<8x32xf32> -> vector<8x32xf32>
    %55 = vector.extract_strided_slice %14 {offsets = [0, 64], sizes = [8, 32], strides = [1, 1]} : vector<8x128xbf16> to vector<8x32xbf16>
    %56 = vector.extract_strided_slice %16 {offsets = [0, 64], sizes = [8, 32], strides = [1, 1]} : vector<8x128xbf16> to vector<8x32xbf16>
    %57 = vector.extract_strided_slice %18 {offsets = [0, 64], sizes = [8, 32], strides = [1, 1]} : vector<8x128xbf16> to vector<8x32xbf16>
    %cst_19 = arith.constant dense<0.000000e+00> : vector<8x8xf32>
    %58 = tpu.matmul %55, %56, %cst_19 {dimension_numbers = #tpu.dot_dimension_numbers<[1], [1], [0], [0], [0, 0, 1, 0], [], []>} : vector<8x32xbf16>, vector<8x32xbf16>, vector<8x8xf32> -> vector<8x8xf32>
    %cst_20 = arith.constant -1.000000e+06 : f32
    %59 = vector.broadcast %cst_20 : f32 to vector<8x8xf32>
    %60 = arith.select %12, %58, %59 : vector<8x8xi1>, vector<8x8xf32>
    %cst_21 = arith.constant dense<0xFF800000> : vector<8xf32>
    %61 = vector.multi_reduction <maximumf>, %60, %cst_21 [0] : vector<8x8xf32> to vector<8xf32>
    %62 = vector.shape_cast %61 : vector<8xf32> to vector<1x8xf32>
    %63 = vector.broadcast %62 : vector<1x8xf32> to vector<8x8xf32>
    %64 = arith.subf %60, %63 : vector<8x8xf32>
    %65 = math.exp %64 : vector<8x8xf32>
    %cst_22 = arith.constant dense<0.000000e+00> : vector<8xf32>
    %66 = vector.multi_reduction <add>, %65, %cst_22 [0] : vector<8x8xf32> to vector<8xf32>
    %67 = vector.shape_cast %66 : vector<8xf32> to vector<1x8xf32>
    %68 = tpu.reciprocal %67 {approx = true} : vector<1x8xf32> -> vector<1x8xf32>
    %69 = vector.broadcast %68 : vector<1x8xf32> to vector<8x8xf32>
    %70 = arith.mulf %65, %69 : vector<8x8xf32>
    %71 = arith.truncf %70 : vector<8x8xf32> to vector<8x8xbf16>
    %cst_23 = arith.constant dense<0.000000e+00> : vector<8x32xf32>
    %72 = tpu.matmul %71, %57, %cst_23 {dimension_numbers = #tpu.dot_dimension_numbers<[1], [0], [0], [1], [0, 0, 1, 1], [], []>} : vector<8x8xbf16>, vector<8x32xbf16>, vector<8x32xf32> -> vector<8x32xf32>
    %73 = vector.extract_strided_slice %14 {offsets = [0, 96], sizes = [8, 32], strides = [1, 1]} : vector<8x128xbf16> to vector<8x32xbf16>
    %74 = vector.extract_strided_slice %16 {offsets = [0, 96], sizes = [8, 32], strides = [1, 1]} : vector<8x128xbf16> to vector<8x32xbf16>
    %75 = vector.extract_strided_slice %18 {offsets = [0, 96], sizes = [8, 32], strides = [1, 1]} : vector<8x128xbf16> to vector<8x32xbf16>
    %cst_24 = arith.constant dense<0.000000e+00> : vector<8x8xf32>
    %76 = tpu.matmul %73, %74, %cst_24 {dimension_numbers = #tpu.dot_dimension_numbers<[1], [1], [0], [0], [0, 0, 1, 0], [], []>} : vector<8x32xbf16>, vector<8x32xbf16>, vector<8x8xf32> -> vector<8x8xf32>
    %cst_25 = arith.constant -1.000000e+06 : f32
    %77 = vector.broadcast %cst_25 : f32 to vector<8x8xf32>
    %78 = arith.select %12, %76, %77 : vector<8x8xi1>, vector<8x8xf32>
    %cst_26 = arith.constant dense<0xFF800000> : vector<8xf32>
    %79 = vector.multi_reduction <maximumf>, %78, %cst_26 [0] : vector<8x8xf32> to vector<8xf32>
    %80 = vector.shape_cast %79 : vector<8xf32> to vector<1x8xf32>
    %81 = vector.broadcast %80 : vector<1x8xf32> to vector<8x8xf32>
    %82 = arith.subf %78, %81 : vector<8x8xf32>
    %83 = math.exp %82 : vector<8x8xf32>
    %cst_27 = arith.constant dense<0.000000e+00> : vector<8xf32>
    %84 = vector.multi_reduction <add>, %83, %cst_27 [0] : vector<8x8xf32> to vector<8xf32>
    %85 = vector.shape_cast %84 : vector<8xf32> to vector<1x8xf32>
    %86 = tpu.reciprocal %85 {approx = true} : vector<1x8xf32> -> vector<1x8xf32>
    %87 = vector.broadcast %86 : vector<1x8xf32> to vector<8x8xf32>
    %88 = arith.mulf %83, %87 : vector<8x8xf32>
    %89 = arith.truncf %88 : vector<8x8xf32> to vector<8x8xbf16>
    %cst_28 = arith.constant dense<0.000000e+00> : vector<8x32xf32>
    %90 = tpu.matmul %89, %75, %cst_28 {dimension_numbers = #tpu.dot_dimension_numbers<[1], [0], [0], [1], [0, 0, 1, 1], [], []>} : vector<8x8xbf16>, vector<8x32xbf16>, vector<8x32xf32> -> vector<8x32xf32>
    %c0_29 = arith.constant 0 : index
    %c0_30 = arith.constant 0 : index
    %c0_31 = arith.constant 0 : index
    %91 = vector.load %arg6[%c0_29, %c0_30, %c0_31] : memref<1x8x128xf32, #tpu.memory_space<vmem>>, vector<1x8x128xf32>
    %92 = vector.shape_cast %91 : vector<1x8x128xf32> to vector<8x128xf32>
    %93 = tpu.concatenate %36, %54, %72, %90 in 1 : vector<8x32xf32>, vector<8x32xf32>, vector<8x32xf32>, vector<8x32xf32> -> vector<8x128xf32>
    %94 = arith.addf %92, %93 : vector<8x128xf32>
    %c0_32 = arith.constant 0 : index
    %c0_33 = arith.constant 0 : index
    %c0_34 = arith.constant 0 : index
    %95 = vector.load %arg6[%c0_32, %c0_33, %c0_34] : memref<1x8x128xf32, #tpu.memory_space<vmem>>, vector<1x8x128xf32>
    %96 = vector.shape_cast %95 : vector<1x8x128xf32> to vector<8x128xf32>
    %97 = vector.shape_cast %94 : vector<8x128xf32> to vector<1x8x128xf32>
    tpu.vector_store %arg6[%c0_32, %c0_33, %c0_34], %97 {strides = array<i32>} : memref<1x8x128xf32, #tpu.memory_space<vmem>>, vector<1x8x128xf32>,
    return
  }
  func.func @transform_0(%arg0: i32, %arg1: i32, %arg2: memref<2xi32, #tpu.memory_space<smem>>) -> (i32, i32, i32) {
    %c0_i32 = arith.constant 0 : i32
    %c0_i32_0 = arith.constant 0 : i32
    %c0_i32_1 = arith.constant 0 : i32
    return %arg0, %c0_i32, %c0_i32_0 : i32, i32, i32
  }
  func.func @transform_1(%arg0: i32, %arg1: i32, %arg2: memref<2xi32, #tpu.memory_space<smem>>) -> (i32, i32, i32) {
    %c0_i32 = arith.constant 0 : i32
    %c0_i32_0 = arith.constant 0 : i32
    return %arg0, %arg1, %c0_i32 : i32, i32, i32
  }
  func.func @transform_2(%arg0: i32, %arg1: i32, %arg2: memref<2xi32, #tpu.memory_space<smem>>) -> (i32, i32, i32) {
    %c0_i32 = arith.constant 0 : i32
    %c0_i32_0 = arith.constant 0 : i32
    return %arg0, %arg1, %c0_i32 : i32, i32, i32
  }
  func.func @transform_3(%arg0: i32, %arg1: i32, %arg2: memref<2xi32, #tpu.memory_space<smem>>) -> (i32, i32, i32) {
    %c0_i32 = arith.constant 0 : i32
    %c0_i32_0 = arith.constant 0 : i32
    %c0_i32_1 = arith.constant 0 : i32
    return %arg0, %c0_i32, %c0_i32_0 : i32, i32, i32
  }
}

</mosaic_0001>

<bundles_post_ra>
// kernel: multi_head_attention.1
= control target key start
LH: loop header
LB: loop body
LE: loop exit
PB: predicated region body
PF: predicated region fallthrough
CT: control target
= control target key end

     0   :  { %s1182_s0 = inlined_call_operand.vmem [shape: s32[2], index: 0, kind: input, shape index: {}]   ;;  %s1183_s1 = inlined_call_operand.vmem [shape: bf16[2,8,128], index: 1, kind: input, shape index: {}]   ;;  %s1184_s2 = inlined_call_operand.vmem [shape: bf16[2,8,128], index: 2, kind: input, shape index: {}]   ;;  %s1185_s3 = inlined_call_operand.vmem [shape: bf16[2,8,128], index: 3, kind: input, shape index: {}]   ;;  %s1186_s4 = inlined_call_operand.vmem [shape: f32[2,8,128], index: 4, kind: output, shape index: {}]  }
   0x1   :  { %s9_s17 = sshll.u32 %s1182_s0, 4  ;;  %s10_s17 = int_to_ptr.vmem [resolvable:$true] %s9_s17 }
   0x2   :  { %s986_s18 = scalar_lea.vmem %s10_s17, 16  ;;  %p991_p1 = scmp.lt.s32.totalorder %s10_s17, %s10_s17 }
   0x3   :  { %p987_p0 = scmp.ne.s32.totalorder %s10_s17, %s986_s18  ;;  %p992_p2 = scmp.lt.s32.totalorder %s986_s18, %s986_s18 }
   0x5   :  { %p993_p3 = por %p992_p2, %p991_p1 }
   0x7   :  { %p994_p4 = pnand %p993_p3, %p987_p0 }
   0x9   :  { %997 = shalt.err (!%p994_p4)  }
   0xa   :  { %s1024_s19 = smov [#allocation3]  }
   0xb   :  { %12 = dma.vmem_to_smem %s10_s17, 16, %s1024_s19, [#allocation2] }
   0xc   :  { %1010 = dma.done.wait [#allocation2], 16 }
   0xd   :  { %1011 = vsyncadd [#allocation2], 4294967280 }
   0xe   :  { %14 = sfence }
   0xf   :  { %s1058_s20 = smov 0   ;;  %s1060_s21 = smov 0  }
  0x10   :  { %s1062_s22 = smov 0  }
  0x11 LB: > { %s32_s0 = sadd.s32 1, %s1018_s21  ;;  %p855_p5 = scmp.ge.s32.totalorder %s1022_s22, 1  ;;  %s1022_s22 = sphi %s1062_s22, %s20_s22   ;;  %s1018_s21 = sphi %s1060_s21, %s1190_s21   ;;  %s1014_s20 = sphi %s1058_s20, %s1189_s20  }
  0x12   : > { %p34_p6 = scmp.ge.s32.totalorder %s32_s0, 2  ;;  %p183_p7 = scmp.lt.s32.totalorder %s1022_s22, 3 }
  0x14   : > { %s1192_s0 = smov (%p34_p6, %s32_s0), 0  ;;  %p184_p8 = pnand %p855_p5, %p183_p7 }
  0x15   : > { %p219_p9 = scmp.lt.s32.totalorder (!%p184_p8), %s1014_s20, 1  ;;  %s1027_s5 = smov (!%p184_p8), 96  }
  0x16   : > { %187 = sbr.rel (%p184_p8) target bundleno = 886 (0x376), region = 32  ;;  %s1028_s6 = smov (!%p184_p8), 64  }
  0x17   : > { %s1029_s7 = smov (!%p184_p8), 32   ;;  %s252_s11 = sld [smem:[#allocation3 + %s1014_s20]] (!%p184_p8) }
  0x1b   : > { %v1025_v0 = vmov 0.0   ;;  %vm1026_vm0 = vmmov 0   ;;  %s1083_s23 = scalar_select %p219_p9, %s1014_s20, 1  ;;  %vm258_vm1 = vcmask 261120   ;;  %vm330_vm2 = vcmask 1043456  }
  0x1c   : > { %889 = vmatprep.subr.bf16.mxu0 %v1025_v0  ;;  %891 = vmatprep.mubr.msk.bf16.mxu0 %vm1026_vm0, %v1025_v0  ;;  %v247_v9 = vlaneseq  ;;  %vm306_vm4 = vcmask 64512   ;;  %vm754_vm5 = vcmask 523264   ;;  %vm756_vm6 = vcmask 785408  }
  0x1d   : > { %895 = vmatprep.subr.bf16.mxu1 %v1025_v0  ;;  %897 = vmatprep.mubr.msk.bf16.mxu1 %vm1026_vm0, %v1025_v0  ;;  %s856_s24 = sshll.u32 %s1083_s23, 2  ;;  %v253_v11 = vstv %s252_s11  ;;  %s859_s12 = sshll.u32 %s1083_s23, 3 }
  0x1e   : > { %s229_s27 = scalar_lea.vmem %s1184_s2, %s856_s24  ;;  %s222_s30 = scalar_lea.vmem %s1183_s1, %s856_s24  ;;  %v248_v10 = vand.u32 127, %v247_v9 }
  0x1f   : > { %v256_v1 = vld [vmem:[%s229_s27] sm:$0xf]  ;;  %s236_s10 = scalar_lea.vmem %s1185_s3, %s856_s24  ;;  %s240_s15 = scalar_lea.vmem %s1186_s4, %s859_s12 }
  0x20   : > { %v263_v2 = vsel %vm258_vm1, %v256_v1, 0  ;;  %v863_v3 = vcombine.low %v256_v1, %v256_v1  ;;  %v255_v4 = vld [vmem:[%s222_s30] sm:$0xf]  ;;  %vm1115_vm3 = vcmp.lt.s32.totalorder %v248_v10, %v253_v11 }
  0x21   : > { %890 = vmatpush3.bf16.xpose.msra.mxu0 %v263_v2  ;;  %v862_v5 = vcombine.low %v255_v4, %v255_v4  ;;  %v257_v6 = vld [vmem:[%s236_s10] sm:$0xf] }
  0x22   : > { %382 = vrot.lane.b32.xlu0 %v863_v3, %s1027_s5  ;;  %504 = vrot.lane.b32.xlu1 %v863_v3, %s1028_s6  ;;  %v332_v7 = vsel %vm330_vm2, %v257_v6, 0  ;;  %v865_v8 = vcombine.low %v257_v6, %v257_v6 }
  0x23   : > { %907 = vmatprep.subr.bf16.mxu0 %v1025_v0  ;;  %896 = vmatpush3.bf16.msra.mxu1 %v332_v7 }
  0x24   : > { %901 = vmatprep.subr.bf16.mxu1 %v1025_v0 }
  0x26   : > { %377 = vrot.lane.b32.xlu0 %v862_v5, %s1027_s5  ;;  %502 = vrot.lane.b32.xlu1 %v862_v5, %s1028_s6 }
  0x28   : > { %892 = vmatmul.mubr.msk.bf16.vlgmr.msra.gmra.mxu0 %vm258_vm1, %v255_v4 }
  0x29   : > { %909 = vmatprep.mubr.msk.bf16.mxu0 %vm1026_vm0, %v1025_v0 }
  0x2a   : > { %623 = vrot.lane.b32.xlu0 %v863_v3, %s1029_s7  ;;  %621 = vrot.lane.b32.xlu1 %v862_v5, %s1029_s7 }
  0x2e   : > { %454 = vrot.lane.b32.xlu0 %v865_v8, %s1027_s5  ;;  %573 = vrot.lane.b32.xlu1 %v865_v8, %s1028_s6 }
  0x32   : > { %692 = vrot.lane.b32.xlu0 %v865_v8, %s1029_s7 }
  0x94   : > { %v383_v36 = vpop.permute.xlu0 %382  ;;  %v505_v40 = vpop.permute.xlu1 %504 }
  0x95   : > { %v388_v38 = vsel %vm258_vm1, %v383_v36, 0  ;;  %v510_v42 = vsel %vm258_vm1, %v505_v40, 0 }
  0x98   : > { %v378_v41 = vpop.permute.xlu0 %377  ;;  %v503_v44 = vpop.permute.xlu1 %502 }
  0x9c   : > { %v624_v43 = vpop.permute.xlu0 %623  ;;  %v622_v46 = vpop.permute.xlu1 %621 }
  0x9d   : > { %v629_v45 = vsel %vm258_vm1, %v624_v43, 0 }
  0xa0   : > { %v455_v47 = vpop.permute.xlu0 %454 }
  0xa1   : > { %v460_v48 = vsel %vm330_vm2, %v455_v47, 0 }
  0xa2   : > { %908 = vmatpush3.bf16.msra.mxu0 %v460_v48 }
  0xa3   : > { %919 = vmatprep.subr.bf16.mxu0 %v1025_v0 }
  0xe8   : > { %v299_v13 = vpop.f32.mrf.mxu0 }
  0xe9   : > { %v305_v14 = vsel %vm1115_vm3, %v299_v13, -1000000.0 }
  0xea   : > { %v307_v15 = vsel %vm306_vm4, %v305_v14, -inf  ;;  %v893_v16 = vpop.f32.mrf.mxu0 }
  0xeb   : > { %v308_v17 = vrot.slane %v307_v15, 4 }
  0xec   : > { %v302_v18 = vpop.f32.mrf.mxu0 }
  0xed   : > { %v309_v19 = vmax.f32 %v307_v15, %v308_v17 }
  0xee   : > { %v894_v20 = vpop.f32.mrf.mxu0 }
  0xef   : > { %v310_v21 = vrot.slane %v309_v19, 2 }
  0xf1   : > { %v311_v22 = vmax.f32 %v309_v19, %v310_v21 }
  0xf3   : > { %v312_v23 = vrot.slane %v311_v22, 1 }
  0xf5   : > { %v313_v24 = vmax.f32 %v311_v22, %v312_v23 }
  0xf7   : > { %v314_v25 = vsub.f32 %v305_v14, %v313_v24 }
  0xf9   : > { %v315_v26 = vmul.f32 1.442695, %v314_v25 }
  0xfb   : > { %970 = vpow2.f32 %v315_v26 }
 0x108   : > { %v971_v27 = vpop.eup %970 }
 0x109   : > { %v317_v28 = vsel %vm306_vm4, %v971_v27, 0.0 }
 0x10a   : > { %v318_v29 = vrot.slane %v317_v28, 4 }
 0x10c   : > { %v319_v30 = vadd.f32 %v318_v29, %v317_v28 }
 0x10e   : > { %v320_v31 = vrot.slane %v319_v30, 2 }
 0x110   : > { %v321_v32 = vadd.f32 %v320_v31, %v319_v30 }
 0x112   : > { %v322_v33 = vrot.slane %v321_v32, 1 }
 0x114   : > { %v323_v34 = vadd.f32 %v322_v33, %v321_v32 }
 0x116   : > { %972 = vrcp.f32 %v323_v34 }
 0x123   : > { %v973_v35 = vpop.eup %972 }
 0x124   : > { %v325_v37 = vmul.f32 %v973_v35, %v971_v27 }
 0x126   : > { %v326_v39 = vpack.c.bf16 %v325_v37, %v325_v37 }
 0x128   : > { %898 = vmatmul.mubr.msk.bf16.vlgmr.msra.gmra.mxu1 %vm306_vm4, %v326_v39 }
 0x129   : > { %902 = vmatpush3.bf16.xpose.msra.mxu1 %v388_v38  ;;  %903 = vmatprep.mubr.msk.bf16.mxu1 %vm1026_vm0, %v1025_v0 }
 0x12a   : > { %913 = vmatprep.subr.bf16.mxu1 %v1025_v0 }
 0x130   : > { %904 = vmatmul.mubr.msk.bf16.vlgmr.msra.gmra.mxu1 %vm258_vm1, %v378_v41 }
 0x131   : > { %914 = vmatpush3.bf16.xpose.msra.mxu1 %v510_v42  ;;  %915 = vmatprep.mubr.msk.bf16.mxu1 %vm1026_vm0, %v1025_v0 }
 0x132   : > { %925 = vmatprep.subr.bf16.mxu1 %v1025_v0 }
 0x138   : > { %916 = vmatmul.mubr.msk.bf16.vlgmr.msra.gmra.mxu1 %vm258_vm1, %v503_v44 }
 0x139   : > { %926 = vmatpush3.bf16.xpose.msra.mxu1 %v629_v45  ;;  %927 = vmatprep.mubr.msk.bf16.mxu1 %vm1026_vm0, %v1025_v0 }
 0x140   : > { %928 = vmatmul.mubr.msk.bf16.vlgmr.msra.gmra.mxu1 %vm258_vm1, %v622_v46 }
 0x1e8   : > { %v1140_v49 = vpop.f32.mrf.mxu1 }
 0x1ea   : > { %v899_v50 = vpop.f32.mrf.mxu1 }
 0x1ec   : > { %v371_v51 = vpop.f32.mrf.mxu1 }
 0x1ee   : > { %v900_v52 = vpop.f32.mrf.mxu1 }
 0x1f0   : > { %v424_v53 = vpop.f32.mrf.mxu1 }
 0x1f1   : > { %v430_v54 = vsel %vm1115_vm3, %v424_v53, -1000000.0 }
 0x1f2   : > { %v431_v55 = vsel %vm306_vm4, %v430_v54, -inf  ;;  %v905_v56 = vpop.f32.mrf.mxu1 }
 0x1f3   : > { %v432_v57 = vrot.slane %v431_v55, 4 }
 0x1f4   : > { %v427_v58 = vpop.f32.mrf.mxu1 }
 0x1f5   : > { %v433_v59 = vmax.f32 %v431_v55, %v432_v57  ;;  %v574_v57 = vpop.permute.xlu1 %573 }
 0x1f6   : > { %v906_v60 = vpop.f32.mrf.mxu1 }
 0x1f7   : > { %v434_v61 = vrot.slane %v433_v59, 2  ;;  %v579_v60 = vsel %vm330_vm2, %v574_v57, 0 }
 0x1f8   : > { %v546_v62 = vpop.f32.mrf.mxu1 }
 0x1f9   : > { %v435_v63 = vmax.f32 %v433_v59, %v434_v61  ;;  %v552_v1 = vsel %vm1115_vm3, %v546_v62, -1000000.0 }
 0x1fa   : > { %v553_v2 = vsel %vm306_vm4, %v552_v1, -inf  ;;  %v917_v3 = vpop.f32.mrf.mxu1 }
 0x1fb   : > { %v436_v4 = vrot.slane %v435_v63, 1  ;;  %v554_v5 = vrot.slane %v553_v2, 4 }
 0x1fc   : > { %v549_v6 = vpop.f32.mrf.mxu1 }
 0x1fd   : > { %v437_v7 = vmax.f32 %v435_v63, %v436_v4  ;;  %v555_v8 = vmax.f32 %v553_v2, %v554_v5  ;;  %v693_v63 = vpop.permute.xlu0 %692 }
 0x1fe   : > { %v918_v9 = vpop.f32.mrf.mxu1  ;;  %v698_v2 = vsel %vm330_vm2, %v693_v63, 0 }
 0x1ff   : > { %v438_v10 = vsub.f32 %v430_v54, %v437_v7  ;;  %v556_v11 = vrot.slane %v555_v8, 2 }
 0x200   : > { %v665_v13 = vpop.f32.mrf.mxu1 }
 0x201   : > { %v439_v14 = vmul.f32 1.442695, %v438_v10  ;;  %v557_v15 = vmax.f32 %v555_v8, %v556_v11  ;;  %v671_v16 = vsel %vm1115_vm3, %v665_v13, -1000000.0 }
 0x202   : > { %v672_v17 = vsel %vm306_vm4, %v671_v16, -inf  ;;  %v929_v18 = vpop.f32.mrf.mxu1 }
 0x203   : > { %974 = vpow2.f32 %v439_v14  ;;  %v558_v19 = vrot.slane %v557_v15, 1  ;;  %v673_v20 = vrot.slane %v672_v17, 4 }
 0x204   : > { %v668_v21 = vpop.f32.mrf.mxu1 }
 0x205   : > { %v559_v22 = vmax.f32 %v557_v15, %v558_v19  ;;  %v674_v23 = vmax.f32 %v672_v17, %v673_v20 }
 0x206   : > { %v930_v24 = vpop.f32.mrf.mxu1 }
 0x207   : > { %v560_v25 = vsub.f32 %v552_v1, %v559_v22  ;;  %v675_v26 = vrot.slane %v674_v23, 2 }
 0x209   : > { %v561_v27 = vmul.f32 1.442695, %v560_v25  ;;  %v676_v28 = vmax.f32 %v674_v23, %v675_v26 }
 0x20b   : > { %976 = vpow2.f32 %v561_v27  ;;  %v677_v29 = vrot.slane %v676_v28, 1 }
 0x20d   : > { %v678_v30 = vmax.f32 %v676_v28, %v677_v29 }
 0x20f   : > { %v679_v31 = vsub.f32 %v671_v16, %v678_v30 }
 0x210   : > { %v975_v12 = vpop.eup %974 }
 0x211   : > { %v441_v32 = vsel %vm306_vm4, %v975_v12, 0.0  ;;  %v680_v33 = vmul.f32 1.442695, %v679_v31 }
 0x212   : > { %v442_v34 = vrot.slane %v441_v32, 4 }
 0x213   : > { %978 = vpow2.f32 %v680_v33 }
 0x214   : > { %v443_v35 = vadd.f32 %v442_v34, %v441_v32 }
 0x216   : > { %v444_v36 = vrot.slane %v443_v35, 2 }
 0x218   : > { %v977_v37 = vpop.eup %976  ;;  %v445_v38 = vadd.f32 %v444_v36, %v443_v35 }
 0x219   : > { %v563_v39 = vsel %vm306_vm4, %v977_v37, 0.0 }
 0x21a   : > { %v446_v40 = vrot.slane %v445_v38, 1  ;;  %v564_v41 = vrot.slane %v563_v39, 4 }
 0x21c   : > { %v447_v42 = vadd.f32 %v446_v40, %v445_v38  ;;  %v565_v43 = vadd.f32 %v564_v41, %v563_v39 }
 0x21e   : > { %980 = vrcp.f32 %v447_v42  ;;  %v566_v44 = vrot.slane %v565_v43, 2 }
 0x220   : > { %v979_v45 = vpop.eup %978  ;;  %v567_v46 = vadd.f32 %v566_v44, %v565_v43 }
 0x221   : > { %v682_v47 = vsel %vm306_vm4, %v979_v45, 0.0 }
 0x222   : > { %v568_v48 = vrot.slane %v567_v46, 1  ;;  %v683_v50 = vrot.slane %v682_v47, 4 }
 0x224   : > { %v569_v51 = vadd.f32 %v568_v48, %v567_v46  ;;  %v684_v52 = vadd.f32 %v683_v50, %v682_v47 }
 0x226   : > { %982 = vrcp.f32 %v569_v51  ;;  %v685_v53 = vrot.slane %v684_v52, 2 }
 0x228   : > { %v686_v54 = vadd.f32 %v685_v53, %v684_v52 }
 0x22a   : > { %v687_v55 = vrot.slane %v686_v54, 1 }
 0x22b   : > { %v981_v56 = vpop.eup %980 }
 0x22c   : > { %v688_v58 = vadd.f32 %v687_v55, %v686_v54  ;;  %v449_v59 = vmul.f32 %v981_v56, %v975_v12 }
 0x22e   : > { %984 = vrcp.f32 %v688_v58  ;;  %v450_v61 = vpack.c.bf16 %v449_v59, %v449_v59 }
 0x230   : > { %910 = vmatmul.mubr.msk.bf16.vlgmr.msra.gmra.mxu0 %vm306_vm4, %v450_v61 }
 0x231   : > { %920 = vmatpush3.bf16.msra.mxu0 %v579_v60  ;;  %921 = vmatprep.mubr.msk.bf16.mxu0 %vm1026_vm0, %v1025_v0 }
 0x232   : > { %931 = vmatprep.subr.bf16.mxu0 %v1025_v0 }
 0x233   : > { %v983_v62 = vpop.eup %982 }
 0x234   : > { %v571_v1 = vmul.f32 %v983_v62, %v977_v37 }
 0x236   : > { %v572_v3 = vpack.c.bf16 %v571_v1, %v571_v1 }
 0x238   : > { %922 = vmatmul.mubr.msk.bf16.vlgmr.msra.gmra.mxu0 %vm306_vm4, %v572_v3 }
 0x239   : > { %932 = vmatpush3.bf16.msra.mxu0 %v698_v2  ;;  %933 = vmatprep.mubr.msk.bf16.mxu0 %vm1026_vm0, %v1025_v0 }
 0x23b   : > { %v985_v4 = vpop.eup %984 }
 0x23c   : > { %v690_v5 = vmul.f32 %v985_v4, %v979_v45 }
 0x23e   : > { %v691_v6 = vpack.c.bf16 %v690_v5, %v690_v5 }
 0x240   : > { %934 = vmatmul.mubr.msk.bf16.vlgmr.msra.gmra.mxu0 %vm306_vm4, %v691_v6 }
 0x2f0   : > { %v496_v7 = vpop.f32.mrf.mxu0 }
 0x2f1   : > { %742 = vrot.lane.b32.xlu1 %v496_v7, %s1029_s7 }
 0x2f2   : > { %v911_v8 = vpop.f32.mrf.mxu0 }
 0x2f4   : > { %v499_v9 = vpop.f32.mrf.mxu0 }
 0x2f6   : > { %v912_v10 = vpop.f32.mrf.mxu0 }
 0x2f8   : > { %v615_v11 = vpop.f32.mrf.mxu0 }
 0x2f9   : > { %746 = vrot.lane.b32.xlu0 %v615_v11, %s1028_s6 }
 0x2fa   : > { %v923_v13 = vpop.f32.mrf.mxu0 }
 0x2fc   : > { %v618_v14 = vpop.f32.mrf.mxu0 }
 0x2fe   : > { %v924_v15 = vpop.f32.mrf.mxu0 }
 0x300   : > { %v734_v16 = vpop.f32.mrf.mxu0 }
 0x301   : > { %750 = vrot.lane.b32.xlu1 %v734_v16, %s1027_s5 }
 0x302   : > { %v935_v0 = vpop.f32.mrf.mxu0 }
 0x304   : > { %v737_v17 = vpop.f32.mrf.mxu0 }
 0x306   : > { %v936_v18 = vpop.f32.mrf.mxu0 }
 0x363   : > { %v743_v19 = vpop.permute.xlu1 %742 }
 0x364   : > { %v753_v21 = vsel %vm258_vm1, %v1140_v49, %v743_v19 }
 0x36b   : > { %v747_v20 = vpop.permute.xlu0 %746 }
 0x36c   : > { %v755_v22 = vsel %vm754_vm5, %v753_v21, %v747_v20 }
 0x373   : > { %v751_v23 = vpop.permute.xlu1 %750 }
 0x374   : > { %v757_v24 = vsel %vm756_vm6, %v755_v22, %v751_v23 }
 0x375   : > { %759 = vst [vmem:[%s240_s15] sm:$0xff] %v757_v24 }
 0x376 PF: > { %s20_s22 = sadd.s32 1, %s1022_s22   ;;  %s1189_s20 = smov %s1018_s21 }
 0x377   : > { %p17_p10 = scmp.ge.s32.totalorder %s20_s22, 4   ;;  %s1190_s21 = smov %s1192_s0 }
 0x379   :  { %19 = sbr.rel (!%p17_p10) target bundleno = 17 (0x11), region = 72 }

</bundles_post_ra>
